<compile_context>
chip_gen: v6e
topology: v6e:2x2x1
jax: 0.10.0
libtpu: 0.0.40
codegen_flags: <defaults>
</compile_context>

<pallas_src>
import jax
import jax.numpy as jnp
from jax.experimental import pallas as pl
from jax.experimental.pallas import tpu as pltpu


def _make_mlp_kernel(n_layers):
    """Fused MLP kernel over one batch tile.

    Ref order: x_ref, (w1, b1, w2, b2, ..., wn, bn), o_ref
      x_ref: (tm, D0) f32      wi: (Di-1, Di) bf16     bi: (1, Di) f32
      o_ref: (tm, Dn) f32
    """

    def kernel(x_ref, *refs):
        o_ref = refs[-1]
        h = x_ref[...].astype(jnp.float32)
        for i in range(n_layers):
            w = refs[2 * i][...]        # bf16 MXU operand
            b = refs[2 * i + 1][...]    # f32 bias, broadcast over rows
            y = jnp.dot(h.astype(jnp.bfloat16), w,
                        preferred_element_type=jnp.float32) + b
            if i != n_layers - 1:
                h = jnp.maximum(y, 0.0)                     # ReLU (VPU, f32)
            else:
                # sigmoid(y) = 1 / (1 + exp(-y)); exp + approx recip both on EUP
                h = pl.reciprocal(1.0 + jnp.exp(-y), approx=True)
        o_ref[...] = h.astype(o_ref.dtype)

    return kernel


def discriminator_forward(params, x, *, tm=512):
    """Fused forward pass: Linear+ReLU for all but last layer, Linear+Sigmoid last.

    params: list of (w [K, N] bf16, b [1, N] f32); x: [M, D0] f32.
    Single pallas_call, batch-tiled; only final logits are written to HBM.
    """
    M, D0 = x.shape
    n_layers = len(params)
    assert n_layers >= 1
    assert params[0][0].shape[0] == D0
    d_out = params[-1][0].shape[1]

    # Batch tile size: multiple of 8 (f32 sublanes) unless it spans the full batch.
    tm = min(tm, M)
    if tm < M:
        tm = max(8, (tm // 8) * 8)
    grid = (pl.cdiv(M, tm),)

    in_specs = [pl.BlockSpec((tm, D0), lambda i: (i, 0))]
    flat_wb = []
    for (w, b) in params:
        K, N = w.shape
        in_specs.append(pl.BlockSpec((K, N), lambda i: (0, 0)))   # whole weight, VMEM-resident
        in_specs.append(pl.BlockSpec((1, N), lambda i: (0, 0)))   # whole bias
        flat_wb.append(w)
        flat_wb.append(b)

    return pl.pallas_call(
        _make_mlp_kernel(n_layers),
        out_shape=jax.ShapeDtypeStruct((M, d_out), x.dtype),
        grid=grid,
        in_specs=in_specs,
        out_specs=pl.BlockSpec((tm, d_out), lambda i: (i, 0)),
        compiler_params=pltpu.CompilerParams(
            dimension_semantics=("parallel",),   # batch tiles split across TCs on v7x
        ),
    )(x, *flat_wb)


def init_discriminator_params(key, layer_dims):
    """Deterministic params mimicking nn.Linear default init (uniform +-1/sqrt(fan_in)).

    Weights stored [in_features, out_features] (transposed vs PyTorch), cast to bf16
    for MXU feeding; biases kept f32 with shape (1, N)."""
    params = []
    for i in range(len(layer_dims) - 1):
        fan_in, fan_out = layer_dims[i], layer_dims[i + 1]
        key, kw, kb = jax.random.split(key, 3)
        bound = 1.0 / jnp.sqrt(jnp.float32(fan_in))
        w = jax.random.uniform(kw, (fan_in, fan_out), jnp.float32, -bound, bound)
        b = jax.random.uniform(kb, (1, fan_out), jnp.float32, -bound, bound)
        params.append((w.astype(jnp.bfloat16), b))
    return params


def _reference_matched(params, x):
    """Plain-JAX reference matching the kernel's math (bf16 MXU inputs, f32 accum,
    exact sigmoid)."""
    h = x
    n = len(params)
    for i, (w, b) in enumerate(params):
        y = jnp.dot(h.astype(jnp.bfloat16), w,
                    preferred_element_type=jnp.float32) + b
        h = jax.nn.sigmoid(y) if i == n - 1 else jnp.maximum(y, 0.0)
    return h


def _reference_f32(params, x):
    """Full-precision reference (PyTorch-equivalent semantics)."""
    h = x
    n = len(params)
    for i, (w, b) in enumerate(params):
        y = h @ w.astype(jnp.float32) + b
        h = jax.nn.sigmoid(y) if i == n - 1 else jnp.maximum(y, 0.0)
    return h


if __name__ == "__main__":
    # MLP discriminator ending in a single logit. Batch chosen so the grid has
    # >= 2 batch tiles (pipelining + v7x dual-TC engage).
    layer_dims = [32, 64, 32, 1]
    batch = 256
    tm = 128  # 2 grid steps at batch=256; multiple of 8

    key = jax.random.PRNGKey(0)
    key, kx = jax.random.split(key)
    x = jax.random.normal(kx, (batch, layer_dims[0]), dtype=jnp.float32)

    params = init_discriminator_params(jax.random.PRNGKey(0), layer_dims)

    out = discriminator_forward(params, x, tm=tm)
    out = jax.block_until_ready(out)

    assert out.shape == (batch, layer_dims[-1])

    ref_matched = _reference_matched(params, x)   # same bf16 math, exact sigmoid
    ref_f32 = _reference_f32(params, x)           # PyTorch-equivalent f32 math
    assert jnp.allclose(out, ref_matched, atol=1e-2, rtol=1e-2), (
        "mismatch vs bf16-matched reference")
    assert jnp.allclose(out, ref_f32, atol=5e-2, rtol=5e-2), (
        "mismatch vs f32 reference")

    print("KERNEL_OK")
</pallas_src>

<mosaic_0001>
module attributes {stable_mosaic.version = 11 : i64} {
  func.func @kernel(%arg0: i32, %arg1: memref<128x32xf32, #tpu.memory_space<vmem>>, %arg2: memref<32x64xbf16, #tpu.memory_space<vmem>>, %arg3: memref<1x64xf32, #tpu.memory_space<vmem>>, %arg4: memref<64x32xbf16, #tpu.memory_space<vmem>>, %arg5: memref<1x32xf32, #tpu.memory_space<vmem>>, %arg6: memref<32x1xbf16, #tpu.memory_space<vmem>>, %arg7: memref<1x1xf32, #tpu.memory_space<vmem>>, %arg8: memref<128x1xf32, #tpu.memory_space<vmem>>) attributes {dimension_semantics = [#tpu.dimension_semantics<parallel>], iteration_bounds = array<i64: 2>, scalar_prefetch = 0 : i64, scratch_operands = 0 : i64, tpu.core_type = #tpu.core_type<tc>, window_params = [{transform_indices = @transform_0, window_bounds = array<i64: 128, 32>}, {pipeline_mode = #tpu.pipeline_mode<synchronous>, transform_indices = @transform_1, window_bounds = array<i64: 32, 64>}, {pipeline_mode = #tpu.pipeline_mode<synchronous>, transform_indices = @transform_2, window_bounds = array<i64: 1, 64>}, {pipeline_mode = #tpu.pipeline_mode<synchronous>, transform_indices = @transform_3, window_bounds = array<i64: 64, 32>}, {pipeline_mode = #tpu.pipeline_mode<synchronous>, transform_indices = @transform_4, window_bounds = array<i64: 1, 32>}, {pipeline_mode = #tpu.pipeline_mode<synchronous>, transform_indices = @transform_5, window_bounds = array<i64: 32, 1>}, {pipeline_mode = #tpu.pipeline_mode<synchronous>, transform_indices = @transform_6, window_bounds = array<i64: 1, 1>}, {transform_indices = @transform_7, window_bounds = array<i64: 128, 1>}]} {
    %c0 = arith.constant 0 : index
    %c0_0 = arith.constant 0 : index
    %0 = vector.load %arg1[%c0, %c0_0] : memref<128x32xf32, #tpu.memory_space<vmem>>, vector<128x32xf32>
    %c0_1 = arith.constant 0 : index
    %c0_2 = arith.constant 0 : index
    %1 = vector.load %arg2[%c0_1, %c0_2] : memref<32x64xbf16, #tpu.memory_space<vmem>>, vector<32x64xbf16>
    %c0_3 = arith.constant 0 : index
    %c0_4 = arith.constant 0 : index
    %2 = vector.load %arg3[%c0_3, %c0_4] : memref<1x64xf32, #tpu.memory_space<vmem>>, vector<1x64xf32>
    %3 = arith.truncf %0 : vector<128x32xf32> to vector<128x32xbf16>
    %cst = arith.constant dense<0.000000e+00> : vector<128x64xf32>
    %4 = tpu.matmul %3, %1, %cst {dimension_numbers = #tpu.dot_dimension_numbers<[1], [0], [0], [1], [0, 0, 1, 1], [], []>} : vector<128x32xbf16>, vector<32x64xbf16>, vector<128x64xf32> -> vector<128x64xf32>
    %5 = vector.broadcast %2 : vector<1x64xf32> to vector<128x64xf32>
    %6 = arith.addf %4, %5 : vector<128x64xf32>
    %cst_5 = arith.constant 0.000000e+00 : f32
    %7 = vector.broadcast %cst_5 : f32 to vector<128x64xf32>
    %8 = arith.maximumf %6, %7 : vector<128x64xf32>
    %c0_6 = arith.constant 0 : index
    %c0_7 = arith.constant 0 : index
    %9 = vector.load %arg4[%c0_6, %c0_7] : memref<64x32xbf16, #tpu.memory_space<vmem>>, vector<64x32xbf16>
    %c0_8 = arith.constant 0 : index
    %c0_9 = arith.constant 0 : index
    %10 = vector.load %arg5[%c0_8, %c0_9] : memref<1x32xf32, #tpu.memory_space<vmem>>, vector<1x32xf32>
    %11 = arith.truncf %8 : vector<128x64xf32> to vector<128x64xbf16>
    %cst_10 = arith.constant dense<0.000000e+00> : vector<128x32xf32>
    %12 = tpu.matmul %11, %9, %cst_10 {dimension_numbers = #tpu.dot_dimension_numbers<[1], [0], [0], [1], [0, 0, 1, 1], [], []>} : vector<128x64xbf16>, vector<64x32xbf16>, vector<128x32xf32> -> vector<128x32xf32>
    %13 = vector.broadcast %10 : vector<1x32xf32> to vector<128x32xf32>
    %14 = arith.addf %12, %13 : vector<128x32xf32>
    %cst_11 = arith.constant 0.000000e+00 : f32
    %15 = vector.broadcast %cst_11 : f32 to vector<128x32xf32>
    %16 = arith.maximumf %14, %15 : vector<128x32xf32>
    %c0_12 = arith.constant 0 : index
    %c0_13 = arith.constant 0 : index
    %17 = vector.load %arg6[%c0_12, %c0_13] : memref<32x1xbf16, #tpu.memory_space<vmem>>, vector<32x1xbf16>
    %c0_14 = arith.constant 0 : index
    %c0_15 = arith.constant 0 : index
    %18 = vector.load %arg7[%c0_14, %c0_15] : memref<1x1xf32, #tpu.memory_space<vmem>>, vector<1x1xf32>
    %19 = arith.truncf %16 : vector<128x32xf32> to vector<128x32xbf16>
    %cst_16 = arith.constant dense<0.000000e+00> : vector<128x1xf32>
    %20 = tpu.matmul %19, %17, %cst_16 {dimension_numbers = #tpu.dot_dimension_numbers<[1], [0], [0], [1], [0, 0, 1, 1], [], []>} : vector<128x32xbf16>, vector<32x1xbf16>, vector<128x1xf32> -> vector<128x1xf32>
    %21 = vector.broadcast %18 : vector<1x1xf32> to vector<128x1xf32>
    %22 = arith.addf %20, %21 : vector<128x1xf32>
    %cst_17 = arith.constant 0.000000e+00 : f32
    %23 = vector.broadcast %cst_17 : f32 to vector<128x1xf32>
    %24 = arith.subf %23, %22 : vector<128x1xf32>
    %25 = math.exp %24 : vector<128x1xf32>
    %cst_18 = arith.constant 1.000000e+00 : f32
    %26 = vector.broadcast %cst_18 : f32 to vector<128x1xf32>
    %27 = arith.addf %26, %25 : vector<128x1xf32>
    %28 = tpu.reciprocal %27 {approx = true} : vector<128x1xf32> -> vector<128x1xf32>
    %c0_19 = arith.constant 0 : index
    %c0_20 = arith.constant 0 : index
    %29 = vector.load %arg8[%c0_19, %c0_20] : memref<128x1xf32, #tpu.memory_space<vmem>>, vector<128x1xf32>
    tpu.vector_store %arg8[%c0_19, %c0_20], %28 {strides = array<i32>} : memref<128x1xf32, #tpu.memory_space<vmem>>, vector<128x1xf32>,
    return
  }
  func.func @transform_0(%arg0: i32) -> (i32, i32) {
    %c0_i32 = arith.constant 0 : i32
    %c0_i32_0 = arith.constant 0 : i32
    return %arg0, %c0_i32 : i32, i32
  }
  func.func @transform_1(%arg0: i32) -> (i32, i32) {
    %c0_i32 = arith.constant 0 : i32
    %c0_i32_0 = arith.constant 0 : i32
    %c0_i32_1 = arith.constant 0 : i32
    return %c0_i32, %c0_i32_0 : i32, i32
  }
  func.func @transform_2(%arg0: i32) -> (i32, i32) {
    %c0_i32 = arith.constant 0 : i32
    %c0_i32_0 = arith.constant 0 : i32
    %c0_i32_1 = arith.constant 0 : i32
    return %c0_i32, %c0_i32_0 : i32, i32
  }
  func.func @transform_3(%arg0: i32) -> (i32, i32) {
    %c0_i32 = arith.constant 0 : i32
    %c0_i32_0 = arith.constant 0 : i32
    %c0_i32_1 = arith.constant 0 : i32
    return %c0_i32, %c0_i32_0 : i32, i32
  }
  func.func @transform_4(%arg0: i32) -> (i32, i32) {
    %c0_i32 = arith.constant 0 : i32
    %c0_i32_0 = arith.constant 0 : i32
    %c0_i32_1 = arith.constant 0 : i32
    return %c0_i32, %c0_i32_0 : i32, i32
  }
  func.func @transform_5(%arg0: i32) -> (i32, i32) {
    %c0_i32 = arith.constant 0 : i32
    %c0_i32_0 = arith.constant 0 : i32
    %c0_i32_1 = arith.constant 0 : i32
    return %c0_i32, %c0_i32_0 : i32, i32
  }
  func.func @transform_6(%arg0: i32) -> (i32, i32) {
    %c0_i32 = arith.constant 0 : i32
    %c0_i32_0 = arith.constant 0 : i32
    %c0_i32_1 = arith.constant 0 : i32
    return %c0_i32, %c0_i32_0 : i32, i32
  }
  func.func @transform_7(%arg0: i32) -> (i32, i32) {
    %c0_i32 = arith.constant 0 : i32
    %c0_i32_0 = arith.constant 0 : i32
    return %arg0, %c0_i32 : i32, i32
  }
}

</mosaic_0001>

<bundles_post_ra>
// kernel: tpu_custom_call.1
= control target key start
LH: loop header
LB: loop body
LE: loop exit
PB: predicated region body
PF: predicated region fallthrough
CT: control target
= control target key end

     0   :  { %s1237_s26 = smov 0   ;;  %s1385_s0 = inlined_call_operand.vmem [shape: f32[256,32], index: 0, kind: input, shape index: {}]   ;;  %s1386_s1 = inlined_call_operand.vmem [shape: bf16[32,64], index: 1, kind: input, shape index: {}]   ;;  %s1387_s2 = inlined_call_operand.vmem [shape: f32[1,64], index: 2, kind: input, shape index: {}]   ;;  %s1388_s3 = inlined_call_operand.vmem [shape: bf16[64,32], index: 3, kind: input, shape index: {}]   ;;  %s1389_s4 = inlined_call_operand.vmem [shape: f32[1,32], index: 4, kind: input, shape index: {}]   ;;  %s1390_s5 = inlined_call_operand.vmem [shape: bf16[32,1], index: 5, kind: input, shape index: {}]   ;;  %s1391_s6 = inlined_call_operand.<no memory space> [shape: f32[1,1], index: 6, kind: input, shape index: {}]   ;;  %s1392_s7 = inlined_call_operand.vmem [shape: f32[256,1], index: 7, kind: output, shape index: {}]  }
   0x1   :  { %v12_v0 = vstv %s1391_s6 }
   0x2   :  { %13 = vst [vmem:[#allocation2] sm:$0x1] %v12_v0 }
   0x3 LB: > { %s960_s27 = sadd.s32 4294967295, %s1192_s26   ;;  %p964_p0 = scmp.ge.s32.totalorder %s1192_s26, 1  ;;  %s1192_s26 = sphi %s1237_s26, %s19_s26  }
   0x4   : > { %p240_p1 = scmp.lt.s32.totalorder %s1192_s26, 3 }
   0x6   : > { %p241_p2 = pnand %p964_p0, %p240_p1 }
   0x7   : > { %s965_s6 = sshll.u32 (!%p241_p2), %s960_s27, 4 }
   0x8   : > { %244 = sbr.rel (%p241_p2) target bundleno = 695 (0x2b7), region = 48  ;;  %p273_p3 = scmp.lt.s32.totalorder (!%p241_p2), %s965_s6, 31 }
   0xd   : > { %v1114_v1 = vld [vmem:[%s1386_s1 + $0x8] sm:$0xff]   ;;  %v1115_v2 = vld [vmem:[%s1386_s1] sm:$0xff]   ;;  %s1394_s6 = smov (!%p273_p3, %s965_s6), 31  ;;  %v1116_v3 = vld [vmem:[%s1388_s3 + $0x18] sm:$0xff]   ;;  %vm332_vm0 = vcmask 261120   ;;  %vm517_vm1 = vcmask 523264  }
   0xe   : > { %1038 = vmatprep.subr.bf16.mxu0 %v1114_v1  ;;  %1102 = vmatprep.subr.bf16.mxu1 %v1114_v1  ;;  %s966_s11 = sshll.u32 %s1394_s6, 3  ;;  %v1117_v28 = vld [vmem:[%s1388_s3 + $0x10] sm:$0xff]   ;;  %v1118_v29 = vld [vmem:[%s1388_s3 + $0x8] sm:$0xff]   ;;  %v1119_v30 = vld [vmem:[%s1388_s3] sm:$0xff]   ;;  %vm887_vm2 = vcmask 7168  }
   0xf   : > { %1039 = vmatpush3.bf16.msra.mxu0 %v1114_v1  ;;  %1104 = vmatpush3.bf16.msra.mxu1 %v1114_v1  ;;  %s1262_s14 = scalar_lea.vmem %s1385_s0, %s966_s11  ;;  %v1120_v31 = vld [vmem:[%s1390_s5 + $0x8] sm:$0xff]   ;;  %v969_v34 = vld [vmem:[%s1387_s2] ss:$0 sm:$0xff]  ;;  %s1348_s9 = scalar_lea.vmem %s1392_s7, %s966_s11 }
  0x10   : > { %1040 = vmatprep.subr.bf16.mxu0 %v1115_v2  ;;  %1103 = vmatprep.subr.bf16.mxu1 %v1115_v2  ;;  %v285_v4 = vld [vmem:[%s1262_s14] sm:$0xff]  ;;  %v286_v5 = vld [vmem:[%s1262_s14 + $0x8] sm:$0xff]  ;;  %v287_v6 = vld [vmem:[%s1262_s14 + $0x10] sm:$0xff] }
  0x11   : > { %v306_v7 = vpack.c.bf16 %v286_v5, %v285_v4  ;;  %v288_v8 = vld [vmem:[%s1262_s14 + $0x18] sm:$0xff]  ;;  %v289_v9 = vld [vmem:[%s1262_s14 + $0x20] sm:$0xff]  ;;  %v290_v10 = vld [vmem:[%s1262_s14 + $0x28] sm:$0xff] }
  0x12   : > { %v307_v11 = vpack.c.bf16 %v288_v8, %v287_v6  ;;  %v308_v12 = vpack.c.bf16 %v290_v10, %v289_v9  ;;  %v293_v13 = vld [vmem:[%s1262_s14 + $0x40] sm:$0xff]  ;;  %v294_v14 = vld [vmem:[%s1262_s14 + $0x48] sm:$0xff]  ;;  %v295_v15 = vld [vmem:[%s1262_s14 + $0x50] sm:$0xff] }
  0x13   : > { %1041 = vmatpush3.bf16.msra.mxu0 %v1115_v2  ;;  %1105 = vmatpush3.bf16.msra.mxu1 %v1115_v2  ;;  %v296_v16 = vld [vmem:[%s1262_s14 + $0x58] sm:$0xff]  ;;  %v310_v17 = vpack.c.bf16 %v294_v14, %v293_v13  ;;  %v297_v19 = vld [vmem:[%s1262_s14 + $0x60] sm:$0xff]  ;;  %v298_v20 = vld [vmem:[%s1262_s14 + $0x68] sm:$0xff] }
  0x14   : > { %1058 = vmatprep.subr.bf16.mxu1 %v1116_v3  ;;  %1042 = vmatprep.mubr.msk.bf16.mxu0 %vm332_vm0, %v306_v7  ;;  %v311_v18 = vpack.c.bf16 %v296_v16, %v295_v15  ;;  %v291_v21 = vld [vmem:[%s1262_s14 + $0x30] sm:$0xff]  ;;  %v292_v22 = vld [vmem:[%s1262_s14 + $0x38] sm:$0xff]  ;;  %v312_v23 = vpack.c.bf16 %v298_v20, %v297_v19 }
  0x15   : > { %1050 = vmatprep.mubr.msk.bf16.mxu1 %vm332_vm0, %v310_v17  ;;  %v309_v24 = vpack.c.bf16 %v292_v22, %v291_v21  ;;  %v299_v25 = vld [vmem:[%s1262_s14 + $0x70] sm:$0xff]  ;;  %v300_v26 = vld [vmem:[%s1262_s14 + $0x78] sm:$0xff]  ;;  %1082 = vmatprep.subr.bf16.mxu0 %v1120_v31 }
  0x16   : > { %1043 = vmatmul.mubr.msk.bf16.vlgmr.msra.gmra.mxu0 %vm332_vm0, %v307_v11  ;;  %1051 = vmatmul.mubr.msk.bf16.vlgmr.msra.gmra.mxu1 %vm332_vm0, %v311_v18  ;;  %v313_v27 = vpack.c.bf16 %v300_v26, %v299_v25  ;;  %v1121_v25 = vld [vmem:[%s1390_s5] sm:$0xff]  }
  0x17   : > { %1046 = vmatprep.mubr.msk.bf16.mxu0 %vm332_vm0, %v308_v12  ;;  %1054 = vmatprep.mubr.msk.bf16.mxu1 %vm332_vm0, %v312_v23 }
  0x18   : > { %1059 = vmatpush3.bf16.msra.mxu1 %v1116_v3  ;;  %1083 = vmatpush3.bf16.msra.mxu0 %v1120_v31 }
  0x19   : > { %1060 = vmatprep.subr.bf16.mxu1 %v1117_v28  ;;  %1084 = vmatprep.subr.bf16.mxu0 %v1121_v25 }
  0x1c   : > { %1061 = vmatpush3.bf16.msra.mxu1 %v1117_v28  ;;  %1085 = vmatpush3.bf16.msra.mxu0 %v1121_v25  ;;  %v980_v28 = vld [vmem:[%s1389_s4] ss:$0 sm:$0xff] }
  0x1d   : > { %1062 = vmatprep.subr.bf16.mxu1 %v1118_v29 }
  0x1e   : > { %1047 = vmatmul.mubr.msk.bf16.gmra.mxu0 %vm332_vm0, %v309_v24  ;;  %1055 = vmatmul.mubr.msk.bf16.gmra.mxu1 %vm332_vm0, %v313_v27 }
  0x20   : > { %1063 = vmatpush3.bf16.msra.mxu1 %v1118_v29 }
  0x21   : > { %1064 = vmatprep.subr.bf16.mxu1 %v1119_v30 }
  0x24   : > { %1065 = vmatpush3.bf16.msra.mxu1 %v1119_v30 }
  0xd6   : > { %v1044_v32 = vpop.f32.mrf.mxu0  ;;  %v1052_v35 = vpop.f32.mrf.mxu1 }
  0xd7   : > { %v400_v40 = vadd.f32 %v1044_v32, %v969_v34  ;;  %v432_v11 = vadd.f32 %v1052_v35, %v969_v34 }
  0xd8   : > { %v391_v33 = vpop.f32.mrf.mxu0  ;;  %v423_v39 = vpop.f32.mrf.mxu1 }
  0xd9   : > { %v392_v37 = vadd.f32 %v969_v34, %v391_v33  ;;  %v456_v49 = vmax.f32 %v400_v40, 0.0  ;;  %v424_v52 = vadd.f32 %v969_v34, %v423_v39  ;;  %v464_v16 = vmax.f32 %v432_v11, 0.0 }
  0xda   : > { %v1045_v36 = vpop.f32.mrf.mxu0  ;;  %v1053_v43 = vpop.f32.mrf.mxu1 }
  0xdb   : > { %v403_v38 = vadd.f32 %v1045_v36, %v969_v34  ;;  %v454_v46 = vmax.f32 %v392_v37, 0.0  ;;  %v462_v62 = vmax.f32 %v424_v52, 0.0  ;;  %v435_v13 = vadd.f32 %v1053_v43, %v969_v34 }
  0xdc   : > { %v394_v41 = vpop.f32.mrf.mxu0  ;;  %v426_v48 = vpop.f32.mrf.mxu1 }
  0xdd   : > { %v395_v42 = vadd.f32 %v969_v34, %v394_v41  ;;  %v457_v44 = vmax.f32 %v403_v38, 0.0  ;;  %v427_v53 = vadd.f32 %v969_v34, %v426_v48  ;;  %v465_v17 = vmax.f32 %v435_v13, 0.0 }
  0xde   : > { %v1048_v45 = vpop.f32.mrf.mxu0  ;;  %v1056_v54 = vpop.f32.mrf.mxu1 }
  0xdf   : > { %v455_v47 = vmax.f32 %v395_v42, 0.0  ;;  %v480_v55 = vpack.c.bf16 %v457_v44, %v456_v49  ;;  %v416_v60 = vadd.f32 %v1048_v45, %v969_v34  ;;  %v463_v0 = vmax.f32 %v427_v53, 0.0 }
  0xe0   : > { %v407_v50 = vpop.f32.mrf.mxu0  ;;  %v439_v59 = vpop.f32.mrf.mxu1  ;;  %v484_v19 = vpack.c.bf16 %v465_v17, %v464_v16  ;;  %v448_v20 = vadd.f32 %v1056_v54, %v969_v34 }
  0xe1   : > { %v479_v51 = vpack.c.bf16 %v455_v47, %v454_v46  ;;  %v408_v57 = vadd.f32 %v969_v34, %v407_v50  ;;  %v460_v6 = vmax.f32 %v416_v60, 0.0  ;;  %v483_v8 = vpack.c.bf16 %v463_v0, %v462_v62 }
  0xe2   : > { %v1049_v56 = vpop.f32.mrf.mxu0  ;;  %v1057_v1 = vpop.f32.mrf.mxu1  ;;  %v440_v9 = vadd.f32 %v969_v34, %v439_v59  ;;  %v468_v22 = vmax.f32 %v448_v20, 0.0 }
  0xe3   : > { %v419_v58 = vadd.f32 %v1049_v56, %v969_v34  ;;  %1066 = vmatprep.mubr.msk.bf16.mxu1 %vm517_vm1, %v479_v51  ;;  %v458_v3 = vmax.f32 %v408_v57, 0.0  ;;  %v451_v21 = vadd.f32 %v1057_v1, %v969_v34 }
  0xe4   : > { %v410_v61 = vpop.f32.mrf.mxu0  ;;  %1067 = vmatmul.mubr.msk.bf16.vlgmr.msra.gmra.mxu1 %vm517_vm1, %v480_v55  ;;  %v442_v5 = vpop.f32.mrf.mxu1  ;;  %v466_v14 = vmax.f32 %v440_v9, 0.0 }
  0xe5   : > { %v411_v63 = vadd.f32 %v969_v34, %v410_v61  ;;  %v461_v2 = vmax.f32 %v419_v58, 0.0  ;;  %v443_v10 = vadd.f32 %v969_v34, %v442_v5  ;;  %v469_v23 = vmax.f32 %v451_v21, 0.0 }
  0xe7   : > { %v459_v4 = vmax.f32 %v411_v63, 0.0  ;;  %v482_v12 = vpack.c.bf16 %v461_v2, %v460_v6  ;;  %v467_v15 = vmax.f32 %v443_v10, 0.0  ;;  %v486_v24 = vpack.c.bf16 %v469_v23, %v468_v22 }
  0xe9   : > { %v481_v7 = vpack.c.bf16 %v459_v4, %v458_v3  ;;  %v485_v18 = vpack.c.bf16 %v467_v15, %v466_v14 }
  0xeb   : > { %1070 = vmatprep.mubr.msk.bf16.mxu1 %vm517_vm1, %v481_v7 }
  0xec   : > { %1071 = vmatmul.mubr.msk.bf16.gmra.mxu1 %vm517_vm1, %v482_v12 }
  0xed   : > { %1074 = vmatprep.mubr.msk.bf16.mxu1 %vm517_vm1, %v483_v8 }
  0xf4   : > { %1075 = vmatmul.mubr.msk.bf16.gmra.mxu1 %vm517_vm1, %v484_v19  ;;  %v1325_v19 = vld [vmem:[#allocation2] ss:$0 sm:$0xff] }
  0xf5   : > { %1078 = vmatprep.mubr.msk.bf16.mxu1 %vm517_vm1, %v485_v18 }
  0xfc   : > { %1079 = vmatmul.mubr.msk.bf16.gmra.mxu1 %vm517_vm1, %v486_v24 }
 0x1a4   : > { %v1068_v26 = vpop.f32.mrf.mxu1 }
 0x1a5   : > { %v585_v32 = vadd.f32 %v1068_v26, %v980_v28 }
 0x1a6   : > { %v576_v27 = vpop.f32.mrf.mxu1 }
 0x1a7   : > { %v577_v30 = vadd.f32 %v980_v28, %v576_v27  ;;  %v641_v39 = vmax.f32 %v585_v32, 0.0 }
 0x1a8   : > { %v1069_v29 = vpop.f32.mrf.mxu1 }
 0x1a9   : > { %v588_v31 = vadd.f32 %v1069_v29, %v980_v28  ;;  %v639_v37 = vmax.f32 %v577_v30, 0.0 }
 0x1aa   : > { %v579_v33 = vpop.f32.mrf.mxu1 }
 0x1ab   : > { %v580_v34 = vadd.f32 %v980_v28, %v579_v33  ;;  %v642_v35 = vmax.f32 %v588_v31, 0.0 }
 0x1ac   : > { %v1072_v36 = vpop.f32.mrf.mxu1 }
 0x1ad   : > { %v640_v38 = vmax.f32 %v580_v34, 0.0  ;;  %v661_v42 = vpack.c.bf16 %v642_v35, %v641_v39  ;;  %v601_v46 = vadd.f32 %v1072_v36, %v980_v28 }
 0x1ae   : > { %v592_v40 = vpop.f32.mrf.mxu1 }
 0x1af   : > { %v660_v41 = vpack.c.bf16 %v640_v38, %v639_v37  ;;  %v593_v44 = vadd.f32 %v980_v28, %v592_v40  ;;  %v645_v53 = vmax.f32 %v601_v46, 0.0 }
 0x1b0   : > { %v1073_v43 = vpop.f32.mrf.mxu1 }
 0x1b1   : > { %v604_v45 = vadd.f32 %v1073_v43, %v980_v28  ;;  %1086 = vmatprep.mubr.msk.bf16.mxu0 %vm332_vm0, %v660_v41  ;;  %v643_v51 = vmax.f32 %v593_v44, 0.0 }
 0x1b2   : > { %v595_v47 = vpop.f32.mrf.mxu1  ;;  %1087 = vmatmul.mubr.msk.bf16.vlgmr.msra.gmra.mxu0 %vm332_vm0, %v661_v42 }
 0x1b3   : > { %v596_v48 = vadd.f32 %v980_v28, %v595_v47  ;;  %v646_v49 = vmax.f32 %v604_v45, 0.0 }
 0x1b4   : > { %v1076_v50 = vpop.f32.mrf.mxu1 }
 0x1b5   : > { %v644_v52 = vmax.f32 %v596_v48, 0.0  ;;  %v663_v56 = vpack.c.bf16 %v646_v49, %v645_v53  ;;  %v617_v60 = vadd.f32 %v1076_v50, %v980_v28 }
 0x1b6   : > { %v608_v54 = vpop.f32.mrf.mxu1 }
 0x1b7   : > { %v662_v55 = vpack.c.bf16 %v644_v52, %v643_v51  ;;  %v609_v58 = vadd.f32 %v980_v28, %v608_v54  ;;  %v649_v3 = vmax.f32 %v617_v60, 0.0 }
 0x1b8   : > { %v1077_v57 = vpop.f32.mrf.mxu1 }
 0x1b9   : > { %v620_v59 = vadd.f32 %v1077_v57, %v980_v28  ;;  %1090 = vmatprep.mubr.msk.bf16.mxu0 %vm332_vm0, %v662_v55  ;;  %v647_v1 = vmax.f32 %v609_v58, 0.0 }
 0x1ba   : > { %v611_v61 = vpop.f32.mrf.mxu1  ;;  %1091 = vmatmul.mubr.msk.bf16.gmra.mxu0 %vm332_vm0, %v663_v56 }
 0x1bb   : > { %v612_v62 = vadd.f32 %v980_v28, %v611_v61  ;;  %v650_v63 = vmax.f32 %v620_v59, 0.0 }
 0x1bc   : > { %v1080_v0 = vpop.f32.mrf.mxu1 }
 0x1bd   : > { %v648_v2 = vmax.f32 %v612_v62, 0.0  ;;  %v665_v6 = vpack.c.bf16 %v650_v63, %v649_v3  ;;  %v633_v10 = vadd.f32 %v1080_v0, %v980_v28 }
 0x1be   : > { %v624_v4 = vpop.f32.mrf.mxu1 }
 0x1bf   : > { %v664_v5 = vpack.c.bf16 %v648_v2, %v647_v1  ;;  %v625_v8 = vadd.f32 %v980_v28, %v624_v4  ;;  %v653_v16 = vmax.f32 %v633_v10, 0.0 }
 0x1c0   : > { %v1081_v7 = vpop.f32.mrf.mxu1 }
 0x1c1   : > { %v636_v9 = vadd.f32 %v1081_v7, %v980_v28  ;;  %1094 = vmatprep.mubr.msk.bf16.mxu0 %vm332_vm0, %v664_v5  ;;  %v651_v14 = vmax.f32 %v625_v8, 0.0 }
 0x1c2   : > { %v627_v11 = vpop.f32.mrf.mxu1  ;;  %1095 = vmatmul.mubr.msk.bf16.gmra.mxu0 %vm332_vm0, %v665_v6 }
 0x1c3   : > { %v628_v12 = vadd.f32 %v980_v28, %v627_v11  ;;  %v654_v13 = vmax.f32 %v636_v9, 0.0 }
 0x1c5   : > { %v652_v15 = vmax.f32 %v628_v12, 0.0  ;;  %v667_v18 = vpack.c.bf16 %v654_v13, %v653_v16 }
 0x1c7   : > { %v666_v17 = vpack.c.bf16 %v652_v15, %v651_v14 }
 0x1c9   : > { %1098 = vmatprep.mubr.msk.bf16.mxu0 %vm332_vm0, %v666_v17 }
 0x1ca   : > { %1099 = vmatmul.mubr.msk.bf16.gmra.mxu0 %vm332_vm0, %v667_v18 }
 0x272   : > { %v1088_v20 = vpop.f32.mrf.mxu0 }
 0x273   : > { %v753_v21 = vadd.f32 %v1088_v20, %v1325_v19 }
 0x274   : > { %v744_v22 = vpop.f32.mrf.mxu0 }
 0x275   : > { %v809_v23 = vsub.f32 0.0, %v753_v21  ;;  %v745_v24 = vadd.f32 %v1325_v19, %v744_v22 }
 0x276   : > { %v1089_v25 = vpop.f32.mrf.mxu0 }
 0x277   : > { %v827_v26 = vmul.f32 1.442695, %v809_v23  ;;  %v807_v27 = vsub.f32 0.0, %v745_v24  ;;  %v756_v28 = vadd.f32 %v1089_v25, %v1325_v19 }
 0x278   : > { %v747_v29 = vpop.f32.mrf.mxu0 }
 0x279   : > { %1122 = vpow2.f32 %v827_v26  ;;  %v823_v30 = vmul.f32 1.442695, %v807_v27  ;;  %v810_v31 = vsub.f32 0.0, %v756_v28  ;;  %v748_v32 = vadd.f32 %v1325_v19, %v747_v29 }
 0x27a   : > { %v1092_v33 = vpop.f32.mrf.mxu0 }
 0x27b   : > { %1124 = vpow2.f32 %v823_v30  ;;  %v829_v34 = vmul.f32 1.442695, %v810_v31  ;;  %v808_v35 = vsub.f32 0.0, %v748_v32  ;;  %v769_v36 = vadd.f32 %v1092_v33, %v1325_v19 }
 0x27c   : > { %v760_v37 = vpop.f32.mrf.mxu0 }
 0x27d   : > { %1126 = vpow2.f32 %v829_v34  ;;  %v825_v38 = vmul.f32 1.442695, %v808_v35  ;;  %v813_v39 = vsub.f32 0.0, %v769_v36  ;;  %v761_v40 = vadd.f32 %v1325_v19, %v760_v37 }
 0x27e   : > { %v1093_v41 = vpop.f32.mrf.mxu0 }
 0x27f   : > { %1128 = vpow2.f32 %v825_v38  ;;  %v835_v42 = vmul.f32 1.442695, %v813_v39  ;;  %v811_v43 = vsub.f32 0.0, %v761_v40  ;;  %v772_v44 = vadd.f32 %v1093_v41, %v1325_v19 }
 0x280   : > { %v763_v45 = vpop.f32.mrf.mxu0 }
 0x281   : > { %1130 = vpow2.f32 %v835_v42  ;;  %v831_v46 = vmul.f32 1.442695, %v811_v43  ;;  %v814_v47 = vsub.f32 0.0, %v772_v44  ;;  %v764_v48 = vadd.f32 %v1325_v19, %v763_v45 }
 0x282   : > { %v1096_v49 = vpop.f32.mrf.mxu0 }
 0x283   : > { %1132 = vpow2.f32 %v831_v46  ;;  %v837_v50 = vmul.f32 1.442695, %v814_v47  ;;  %v812_v51 = vsub.f32 0.0, %v764_v48  ;;  %v785_v52 = vadd.f32 %v1096_v49, %v1325_v19 }
 0x284   : > { %v776_v53 = vpop.f32.mrf.mxu0 }
 0x285   : > { %1134 = vpow2.f32 %v837_v50  ;;  %v833_v54 = vmul.f32 1.442695, %v812_v51  ;;  %v817_v55 = vsub.f32 0.0, %v785_v52  ;;  %v777_v56 = vadd.f32 %v1325_v19, %v776_v53 }
 0x286   : > { %v1123_v57 = vpop.eup %1122  ;;  %v1097_v58 = vpop.f32.mrf.mxu0 }
 0x287   : > { %v857_v59 = vadd.f32 1.0, %v1123_v57  ;;  %1136 = vpow2.f32 %v833_v54  ;;  %v843_v60 = vmul.f32 1.442695, %v817_v55  ;;  %v815_v61 = vsub.f32 0.0, %v777_v56 }
 0x288   : > { %v1125_v62 = vpop.eup %1124  ;;  %v788_v63 = vadd.f32 %v1097_v58, %v1325_v19  ;;  %v779_v0 = vpop.f32.mrf.mxu0 }
 0x289   : > { %1138 = vrcp.f32 %v857_v59  ;;  %v855_v1 = vadd.f32 1.0, %v1125_v62  ;;  %v839_v2 = vmul.f32 1.442695, %v815_v61  ;;  %v780_v3 = vadd.f32 %v1325_v19, %v779_v0 }
 0x28a   : > { %v1127_v4 = vpop.eup %1126  ;;  %1140 = vpow2.f32 %v843_v60  ;;  %v818_v5 = vsub.f32 0.0, %v788_v63  ;;  %v1100_v6 = vpop.f32.mrf.mxu0 }
 0x28b   : > { %1142 = vrcp.f32 %v855_v1  ;;  %v858_v7 = vadd.f32 1.0, %v1127_v4  ;;  %v816_v8 = vsub.f32 0.0, %v780_v3  ;;  %v801_v9 = vadd.f32 %v1100_v6, %v1325_v19 }
 0x28c   : > { %v1129_v10 = vpop.eup %1128  ;;  %1144 = vpow2.f32 %v839_v2  ;;  %v845_v11 = vmul.f32 1.442695, %v818_v5  ;;  %v792_v12 = vpop.f32.mrf.mxu0 }
 0x28d   : > { %1146 = vrcp.f32 %v858_v7  ;;  %v856_v13 = vadd.f32 1.0, %v1129_v10  ;;  %v841_v14 = vmul.f32 1.442695, %v816_v8  ;;  %v821_v15 = vsub.f32 0.0, %v801_v9 }
 0x28e   : > { %v1131_v16 = vpop.eup %1130  ;;  %1148 = vpow2.f32 %v845_v11  ;;  %v793_v17 = vadd.f32 %v1325_v19, %v792_v12  ;;  %v1101_v18 = vpop.f32.mrf.mxu0 }
 0x28f   : > { %1150 = vrcp.f32 %v856_v13  ;;  %v861_v20 = vadd.f32 1.0, %v1131_v16  ;;  %v851_v21 = vmul.f32 1.442695, %v821_v15  ;;  %v804_v22 = vadd.f32 %v1101_v18, %v1325_v19 }
 0x290   : > { %v1133_v23 = vpop.eup %1132  ;;  %1152 = vpow2.f32 %v841_v14  ;;  %v819_v24 = vsub.f32 0.0, %v793_v17  ;;  %v795_v25 = vpop.f32.mrf.mxu0 }
 0x291   : > { %1154 = vrcp.f32 %v861_v20  ;;  %v859_v26 = vadd.f32 1.0, %v1133_v23  ;;  %v822_v27 = vsub.f32 0.0, %v804_v22  ;;  %v796_v28 = vadd.f32 %v1325_v19, %v795_v25 }
 0x292   : > { %v1135_v29 = vpop.eup %1134  ;;  %1156 = vpow2.f32 %v851_v21  ;;  %v847_v30 = vmul.f32 1.442695, %v819_v24 }
 0x293   : > { %1158 = vrcp.f32 %v859_v26  ;;  %v862_v31 = vadd.f32 1.0, %v1135_v29  ;;  %v853_v32 = vmul.f32 1.442695, %v822_v27  ;;  %v820_v33 = vsub.f32 0.0, %v796_v28 }
 0x294   : > { %v1137_v34 = vpop.eup %1136  ;;  %1160 = vpow2.f32 %v847_v30 }
 0x295   : > { %1162 = vrcp.f32 %v862_v31  ;;  %v860_v19 = vadd.f32 1.0, %v1137_v34  ;;  %v849_v35 = vmul.f32 1.442695, %v820_v33 }
 0x296   : > { %v1139_v36 = vpop.eup %1138  ;;  %1164 = vpow2.f32 %v853_v32 }
 0x297   : > { %v1141_v37 = vpop.eup %1140  ;;  %890 = vst.msk [vmem:[%s1348_s9 + $0x10] sm:$0xff] %vm887_vm2, %v1139_v36  ;;  %1166 = vrcp.f32 %v860_v19 }
 0x298   : > { %v1143_v38 = vpop.eup %1142  ;;  %v865_v39 = vadd.f32 1.0, %v1141_v37  ;;  %1168 = vpow2.f32 %v849_v35 }
 0x299   : > { %v1145_v40 = vpop.eup %1144  ;;  %888 = vst.msk [vmem:[%s1348_s9] sm:$0xff] %vm887_vm2, %v1143_v38 }
 0x29a   : > { %v1147_v41 = vpop.eup %1146  ;;  %1170 = vrcp.f32 %v865_v39  ;;  %v863_v42 = vadd.f32 1.0, %v1145_v40 }
 0x29b   : > { %v1149_v43 = vpop.eup %1148  ;;  %891 = vst.msk [vmem:[%s1348_s9 + $0x18] sm:$0xff] %vm887_vm2, %v1147_v41 }
 0x29c   : > { %v1151_v44 = vpop.eup %1150  ;;  %1172 = vrcp.f32 %v863_v42  ;;  %v866_v45 = vadd.f32 1.0, %v1149_v43 }
 0x29d   : > { %v1153_v46 = vpop.eup %1152  ;;  %889 = vst.msk [vmem:[%s1348_s9 + $0x8] sm:$0xff] %vm887_vm2, %v1151_v44 }
 0x29e   : > { %v1155_v47 = vpop.eup %1154  ;;  %1174 = vrcp.f32 %v866_v45  ;;  %v864_v48 = vadd.f32 1.0, %v1153_v46 }
 0x29f   : > { %v1157_v49 = vpop.eup %1156  ;;  %894 = vst.msk [vmem:[%s1348_s9 + $0x30] sm:$0xff] %vm887_vm2, %v1155_v47 }
 0x2a0   : > { %v1159_v50 = vpop.eup %1158  ;;  %1176 = vrcp.f32 %v864_v48  ;;  %v869_v51 = vadd.f32 1.0, %v1157_v49 }
 0x2a1   : > { %v1161_v52 = vpop.eup %1160  ;;  %892 = vst.msk [vmem:[%s1348_s9 + $0x20] sm:$0xff] %vm887_vm2, %v1159_v50 }
 0x2a2   : > { %v1163_v53 = vpop.eup %1162  ;;  %1178 = vrcp.f32 %v869_v51  ;;  %v867_v54 = vadd.f32 1.0, %v1161_v52 }
 0x2a3   : > { %v1165_v55 = vpop.eup %1164  ;;  %895 = vst.msk [vmem:[%s1348_s9 + $0x38] sm:$0xff] %vm887_vm2, %v1163_v53 }
 0x2a4   : > { %v1167_v56 = vpop.eup %1166  ;;  %1180 = vrcp.f32 %v867_v54  ;;  %v870_v57 = vadd.f32 1.0, %v1165_v55 }
 0x2a5   : > { %v1169_v58 = vpop.eup %1168  ;;  %893 = vst.msk [vmem:[%s1348_s9 + $0x28] sm:$0xff] %vm887_vm2, %v1167_v56 }
 0x2a6   : > { %1182 = vrcp.f32 %v870_v57  ;;  %v868_v59 = vadd.f32 1.0, %v1169_v58 }
 0x2a7   : > { %v1171_v60 = vpop.eup %1170 }
 0x2a8   : > { %898 = vst.msk [vmem:[%s1348_s9 + $0x50] sm:$0xff] %vm887_vm2, %v1171_v60  ;;  %1184 = vrcp.f32 %v868_v59 }
 0x2a9   : > { %v1173_v61 = vpop.eup %1172 }
 0x2aa   : > { %896 = vst.msk [vmem:[%s1348_s9 + $0x40] sm:$0xff] %vm887_vm2, %v1173_v61 }
 0x2ab   : > { %v1175_v62 = vpop.eup %1174 }
 0x2ac   : > { %899 = vst.msk [vmem:[%s1348_s9 + $0x58] sm:$0xff] %vm887_vm2, %v1175_v62 }
 0x2ad   : > { %v1177_v63 = vpop.eup %1176 }
 0x2ae   : > { %897 = vst.msk [vmem:[%s1348_s9 + $0x48] sm:$0xff] %vm887_vm2, %v1177_v63 }
 0x2af   : > { %v1179_v0 = vpop.eup %1178 }
 0x2b0   : > { %902 = vst.msk [vmem:[%s1348_s9 + $0x70] sm:$0xff] %vm887_vm2, %v1179_v0 }
 0x2b1   : > { %v1181_v1 = vpop.eup %1180 }
 0x2b2   : > { %900 = vst.msk [vmem:[%s1348_s9 + $0x60] sm:$0xff] %vm887_vm2, %v1181_v1 }
 0x2b3   : > { %v1183_v2 = vpop.eup %1182 }
 0x2b4   : > { %903 = vst.msk [vmem:[%s1348_s9 + $0x78] sm:$0xff] %vm887_vm2, %v1183_v2 }
 0x2b5   : > { %v1185_v3 = vpop.eup %1184 }
 0x2b6   : > { %901 = vst.msk [vmem:[%s1348_s9 + $0x68] sm:$0xff] %vm887_vm2, %v1185_v3 }
 0x2b7 PF: > { %s19_s26 = sadd.s32 1, %s1192_s26  }
 0x2b8   : > { %p16_p4 = scmp.ge.s32.totalorder %s19_s26, 4  }
 0x2ba   :  { %18 = sbr.rel (!%p16_p4) target bundleno = 3 (0x3), region = 78 }

</bundles_post_ra>
